<compile_context>
chip_gen: v7x
topology: tpu7x:2x2x1
jax: 0.10.0
libtpu: 0.0.40
codegen_flags: <defaults>
</compile_context>

<pallas_src>
import jax
import jax.numpy as jnp
from jax.experimental import pallas as pl
from jax.experimental.pallas import tpu as pltpu


# ------------------------- plain-JAX glue (preprocessing) -------------------

def remove_self_loop(graph):
    n = graph.shape[0]
    return graph * (1.0 - jnp.eye(n, dtype=graph.dtype))


def get_laplacian(graph, normalize=True):
    """Graph Laplacian via row/col broadcasting (no N^3 diag matmuls)."""
    d = jnp.sum(graph, axis=-1)
    if normalize:
        safe_d = jnp.where(d > 0, d, 1.0)
        inv_sqrt_d = jnp.where(d > 0, 1.0 / jnp.sqrt(safe_d), 0.0)  # guard 0-degree nodes
        L = (jnp.eye(graph.shape[0], dtype=graph.dtype)
             - graph * inv_sqrt_d[:, None] * inv_sqrt_d[None, :])
    else:
        L = jnp.diag(d) - graph
    return L


def cheb_polynomial(laplacian, K):
    """Return [K, N, N] stack of Chebyshev polynomials T_0..T_{K-1} of L."""
    n = laplacian.shape[0]
    lap = laplacian.astype(jnp.float32)
    polys = [jnp.eye(n, dtype=jnp.float32)]
    if K > 1:
        polys.append(lap)
        for _ in range(2, K):
            polys.append(2.0 * (lap @ polys[-1]) - polys[-2])
    return jnp.stack(polys[:K], axis=0)


def _round_up(x, m):
    return (x + m - 1) // m * m


# ------------------------------- Pallas kernel -------------------------------

def chebconv_kernel(t_ref, v_ref, b_ref, o_ref):
    # t_ref: [TM, K*Np] bf16   (row tile of concatenated Chebyshev polys)
    # v_ref: [1, K*Np, Dp] bf16 (per-batch stacked X_b @ W_k)
    # b_ref: [1, Dp] f32
    # o_ref: [1, TM, Dp] f32
    acc = jnp.dot(t_ref[...], v_ref[0], preferred_element_type=jnp.float32)
    o_ref[0] = (acc + b_ref[...]).astype(o_ref.dtype)


def chebconv_forward(x, graph, weight, bias, normalize=True):
    """
    x:      [B, N, C]     float32
    graph:  [N, N]        float32 (adjacency; self-loops removed here)
    weight: [K, 1, C, D]  float32 (K = cheb order + 1)
    bias:   [1, 1, D]     float32
    returns [B, N, D]     float32
    """
    B, N, C = x.shape
    K = weight.shape[0]
    D = weight.shape[-1]

    x = x.astype(jnp.float32)
    graph = graph.astype(jnp.float32)
    w = weight.reshape(K, C, D).astype(jnp.float32)
    b = bias.reshape(D).astype(jnp.float32)

    # Preprocessing (tiny, sequential K-recursion -> plain JAX).
    L = get_laplacian(remove_self_loop(graph), normalize)
    mul_L = cheb_polynomial(L, K)                                  # [K, N, N] f32

    # TPU-friendly padding: row tiles of TM (multiple of 8), lane-dense D.
    TM = min(256, _round_up(N, 8))
    Np = _round_up(N, TM)
    Dp = _round_up(D, 128)
    KN = K * Np
    NT = Np // TM

    mul_L_p = jnp.zeros((K, Np, Np), jnp.float32).at[:, :N, :N].set(mul_L)
    x_p = jnp.zeros((B, Np, C), jnp.float32).at[:, :N, :].set(x)
    w_p = jnp.zeros((K, C, Dp), jnp.float32).at[:, :, :D].set(w)
    b_p = jnp.zeros((1, Dp), jnp.float32).at[0, :D].set(b)

    # T_concat[n, k*Np + m] = T_k[n, m]   -> [Np, K*Np]   (bf16 stream)
    t_concat = jnp.transpose(mul_L_p, (1, 0, 2)).reshape(Np, KN).astype(jnp.bfloat16)
    # V[b, k*Np + m, d] = (X_b @ W_k)[m, d] -> [B, K*Np, Dp]  (tiny FLOPs, wrapper)
    v = jnp.einsum('bnc,kcd->bknd', x_p, w_p).reshape(B, KN, Dp).astype(jnp.bfloat16)

    out = pl.pallas_call(
        chebconv_kernel,
        out_shape=jax.ShapeDtypeStruct((B, Np, Dp), jnp.float32),
        grid_spec=pltpu.PrefetchScalarGridSpec(
            num_scalar_prefetch=0,
            grid=(NT, B),  # B innermost: T row tile stays resident across batches
            in_specs=[
                pl.BlockSpec((TM, KN), lambda nt, bi: (nt, 0)),      # T rows
                pl.BlockSpec((1, KN, Dp), lambda nt, bi: (bi, 0, 0)),  # V_b
                pl.BlockSpec((1, Dp), lambda nt, bi: (0, 0)),          # bias
            ],
            out_specs=pl.BlockSpec((1, TM, Dp), lambda nt, bi: (bi, nt, 0)),
        ),
        compiler_params=pltpu.CompilerParams(
            dimension_semantics=("parallel", "parallel"),
            vmem_limit_bytes=48 * 1024 * 1024,
        ),
    )(t_concat, v, b_p)

    return out[:, :N, :D]


# ----------------------------------- main ------------------------------------

if __name__ == "__main__":
    key = jax.random.PRNGKey(0)
    k_graph, k_x, k_w = jax.random.split(key, 3)

    # Small, deterministic example shapes (module: in_c=4, out_c=8, K=2).
    B, N, in_c, out_c, cheb_K = 2, 16, 4, 8, 2
    Kp1 = cheb_K + 1

    # Symmetric positive adjacency with no zero-degree nodes.
    A = jax.random.uniform(k_graph, (N, N), dtype=jnp.float32, minval=0.1, maxval=1.0)
    A = 0.5 * (A + A.T)

    x = jax.random.normal(k_x, (B, N, in_c), dtype=jnp.float32)

    # Deterministic init mimicking xavier_normal_ on [K+1, 1, C, D].
    fan_in = 1 * in_c * out_c
    fan_out = Kp1 * in_c * out_c
    std = (2.0 / (fan_in + fan_out)) ** 0.5
    weight = std * jax.random.normal(k_w, (Kp1, 1, in_c, out_c), dtype=jnp.float32)
    bias = jnp.zeros((1, 1, out_c), dtype=jnp.float32)

    out = chebconv_forward(x, A, weight, bias, normalize=True)
    out = jax.block_until_ready(out)

    # Pure-JAX f32 reference (module semantics). Kernel streams bf16 operands
    # with f32 accumulation, so compare with a bf16-appropriate tolerance.
    L = get_laplacian(remove_self_loop(A), True)
    mul_L = cheb_polynomial(L, Kp1)                          # [K, N, N]
    ref = jnp.einsum('knm,bmc->kbnc', mul_L, x)              # [K, B, N, C]
    ref = jnp.einsum('kbnc,kcd->kbnd', ref, weight.reshape(Kp1, in_c, out_c))
    ref = jnp.sum(ref, axis=0) + bias                        # [B, N, D]

    assert out.shape == (B, N, out_c)
    assert jnp.allclose(out, ref, atol=1e-2, rtol=1e-2), (
        float(jnp.max(jnp.abs(out - ref))))
    print("KERNEL_OK")
</pallas_src>

<mosaic_0001>
module attributes {stable_mosaic.version = 11 : i64} {
  func.func @chebconv_kernel(%arg0: i32, %arg1: i32, %arg2: memref<16x48xbf16, #tpu.memory_space<vmem>>, %arg3: memref<1x48x128xbf16, #tpu.memory_space<vmem>>, %arg4: memref<1x128xf32, #tpu.memory_space<vmem>>, %arg5: memref<1x16x128xf32, #tpu.memory_space<vmem>>) attributes {dimension_semantics = [#tpu.dimension_semantics<parallel>, #tpu.dimension_semantics<parallel>], iteration_bounds = array<i64: 1, 2>, scalar_prefetch = 0 : i64, scratch_operands = 0 : i64, tpu.core_type = #tpu.core_type<tc>, window_params = [{transform_indices = @transform_0, window_bounds = array<i64: 16, 48>}, {transform_indices = @transform_1, window_bounds = array<i64: 1, 48, 128>}, {pipeline_mode = #tpu.pipeline_mode<synchronous>, transform_indices = @transform_2, window_bounds = array<i64: 1, 128>}, {transform_indices = @transform_3, window_bounds = array<i64: 1, 16, 128>}]} {
    %c0 = arith.constant 0 : index
    %c0_0 = arith.constant 0 : index
    %0 = vector.load %arg2[%c0, %c0_0] : memref<16x48xbf16, #tpu.memory_space<vmem>>, vector<16x48xbf16>
    %c0_1 = arith.constant 0 : index
    %c0_2 = arith.constant 0 : index
    %c0_3 = arith.constant 0 : index
    %1 = vector.load %arg3[%c0_1, %c0_2, %c0_3] : memref<1x48x128xbf16, #tpu.memory_space<vmem>>, vector<1x48x128xbf16>
    %2 = vector.shape_cast %1 : vector<1x48x128xbf16> to vector<48x128xbf16>
    %cst = arith.constant dense<0.000000e+00> : vector<16x128xf32>
    %3 = tpu.matmul %0, %2, %cst {dimension_numbers = #tpu.dot_dimension_numbers<[1], [0], [0], [1], [0, 0, 1, 1], [], []>} : vector<16x48xbf16>, vector<48x128xbf16>, vector<16x128xf32> -> vector<16x128xf32>
    %c0_4 = arith.constant 0 : index
    %c0_5 = arith.constant 0 : index
    %4 = vector.load %arg4[%c0_4, %c0_5] : memref<1x128xf32, #tpu.memory_space<vmem>>, vector<1x128xf32>
    %5 = vector.broadcast %4 : vector<1x128xf32> to vector<16x128xf32>
    %6 = arith.addf %3, %5 : vector<16x128xf32>
    %c0_6 = arith.constant 0 : index
    %c0_7 = arith.constant 0 : index
    %c0_8 = arith.constant 0 : index
    %7 = vector.load %arg5[%c0_6, %c0_7, %c0_8] : memref<1x16x128xf32, #tpu.memory_space<vmem>>, vector<1x16x128xf32>
    %8 = vector.shape_cast %7 : vector<1x16x128xf32> to vector<16x128xf32>
    %9 = vector.shape_cast %6 : vector<16x128xf32> to vector<1x16x128xf32>
    tpu.vector_store %arg5[%c0_6, %c0_7, %c0_8], %9 {strides = array<i32>} : memref<1x16x128xf32, #tpu.memory_space<vmem>>, vector<1x16x128xf32>,
    return
  }
  func.func @transform_0(%arg0: i32, %arg1: i32) -> (i32, i32) {
    %c0_i32 = arith.constant 0 : i32
    %c0_i32_0 = arith.constant 0 : i32
    return %arg0, %c0_i32 : i32, i32
  }
  func.func @transform_1(%arg0: i32, %arg1: i32) -> (i32, i32, i32) {
    %c0_i32 = arith.constant 0 : i32
    %c0_i32_0 = arith.constant 0 : i32
    %c0_i32_1 = arith.constant 0 : i32
    return %arg1, %c0_i32, %c0_i32_0 : i32, i32, i32
  }
  func.func @transform_2(%arg0: i32, %arg1: i32) -> (i32, i32) {
    %c0_i32 = arith.constant 0 : i32
    %c0_i32_0 = arith.constant 0 : i32
    %c0_i32_1 = arith.constant 0 : i32
    return %c0_i32, %c0_i32_0 : i32, i32
  }
  func.func @transform_3(%arg0: i32, %arg1: i32) -> (i32, i32, i32) {
    %c0_i32 = arith.constant 0 : i32
    %c0_i32_0 = arith.constant 0 : i32
    return %arg1, %arg0, %c0_i32 : i32, i32, i32
  }
}

</mosaic_0001>

<bundles_post_ra>
// kernel: tpu_custom_call.1
= control target key start
LH: loop header
LB: loop body
LE: loop exit
PB: predicated region body
PF: predicated region fallthrough
CT: control target
= control target key end

     0   :  { %8 = vsyncpa [#allocation3], 0  ;;  %s947_s0 = inlined_call_operand.hbm [shape: bf16[16,48], index: 0, kind: input, shape index: {}]   ;;  %s948_s1 = inlined_call_operand.hbm [shape: bf16[2,48,128], index: 1, kind: input, shape index: {}]   ;;  %s949_s2 = inlined_call_operand.vmem [shape: f32[1,128], index: 2, kind: input, shape index: {}]   ;;  %s950_s3 = inlined_call_operand.hbm [shape: f32[2,16,128], index: 3, kind: output, shape index: {}]  }
   0x1   :  { %9 = vsyncpa [#allocation6], 0 }
   0x2   :  { %11 = vsyncpa [#allocation6 + $0x1], 0 }
   0x3   :  { %12 = vsyncpa [#allocation4], 0 }
   0x4   :  { %14 = vsyncpa [#allocation4 + $0x1], 0  ;;  %s724_s12 = smov 0   ;;  %s726_s13 = smov 0  }
   0x5   :  { %s728_s14 = smov 0   ;;  %s730_s15 = smov 0  }
   0x6   :  { %s732_s16 = smov 0   ;;  %s734_s17 = smov 0  }
   0x7 LB: > { %s428_s18 = sadd.s32 4294967295, %s693_s17   ;;  %s429_s19 = sadd.s32 4294967294, %s693_s17   ;;  %s693_s17 = sphi %s734_s17, %s20_s17   ;;  %s689_s16 = sphi %s732_s16, %s973_s16   ;;  %s685_s15 = sphi %s730_s15, %s972_s15   ;;  %s681_s14 = sphi %s728_s14, %s971_s14   ;;  %s677_s13 = sphi %s726_s13, %s970_s13   ;;  %s673_s12 = sphi %s724_s12, %s969_s12  }
   0x8   : > { %p78_p0 = scmp.ne.s32.totalorder %s677_s13, %s673_s12  ;;  %p758_p1 = scmp.eq.s32.totalorder %s428_s18, 0 }
   0x9   : > { %p762_p2 = scmp.eq.s32.totalorder %s428_s18, 1  ;;  %p131_p3 = scmp.eq.s32.totalorder %s429_s19, 1 }
   0xa   : > { %s955_s20 = scalar_select %p758_p1, 1, 0 }
   0xb   : > { %s956_s21 = scalar_select %p762_p2, 1, 0 }
   0xc   : > { %p768_p4 = por %p758_p1, %p78_p0  ;;  %p430_p5 = scmp.ge.s32.totalorder %s693_s17, 1 }
   0xd   : > { %p773_p6 = por %p131_p3, %p78_p0  ;;  %p138_p7 = scmp.lt.s32.totalorder %s693_s17, 3 }
   0xe   : > { %s957_s22 = scalar_select %p768_p4, 1, 0 }
   0xf   : > { %s958_s23 = scalar_select %p773_p6, 1, 0 }
  0x10   : > { %p778_p8 = pnand %p430_p5, %p138_p7  ;;  %s695_s25 = smov [#allocation2]  }
  0x11   : > { %s153_s26 = sshll.u32 %s695_s25, 4  ;;  %s29_s28 = sadd.s32 1, %s689_s16  ;;  %s154_s26 = int_to_ptr.vmem [resolvable:$true] %s153_s26 }
  0x12   : > { %s959_s24 = scalar_select %p778_p8, 1, 0 }
  0x13   : > { %p474_p9 = pneg %p778_p8  ;;  %s549_s4 = scalar_lea.hbm %s947_s0, 128 }
  0x14   : > { %p550_p12 = scmp.ne.s32.totalorder %s947_s0, %s549_s4  ;;  %p556_p5 = scmp.lt.u32.totalorder %s549_s4, %s947_s0 }
  0x15   : > { %p787_p11 = pnand %p474_p9, %p758_p1 }
  0x17   : > { %p551_p13 = pneg %p787_p11 }
  0x19   : > { %p552_p0 = pnand %p551_p13, %p550_p12 }
  0x1b   : > { %p553_p3 = pneg %p552_p0 }
  0x1d   : > { %p558_p7 = pnand %p556_p5, %p553_p3 }
  0x1f   : > { %561 = shalt.err (!%p558_p7)
}
  0x20   : > { %s562_s9 = scalar_lea.vmem %s154_s26, 128  ;;  %p570_p4 = scmp.lt.s32.totalorder %s154_s26, %s154_s26 }
  0x21   : > { %p563_p9 = scmp.ne.s32.totalorder %s154_s26, %s562_s9  ;;  %p571_p1 = scmp.lt.s32.totalorder %s562_s9, %s562_s9 }
  0x23   : > { %p565_p10 = pnand %p563_p9, %p551_p13  ;;  %p572_p8 = por %p571_p1, %p570_p4 }
  0x25   : > { %p566_p6 = pneg %p565_p10 }
  0x27   : > { %p573_p2 = pnand %p572_p8, %p566_p6 }
  0x29   : > { %576 = shalt.err (!%p573_p2)
}
  0x2a   : > { %s696_s10 = smov 64   ;;  %s697_s11 = smov 4  }
  0x2b   : > { %477 = dma.hbm_to_vmem [thread:$0]  (!%p787_p11), %s947_s0, 128, %s154_s26, [#allocation3], %s696_s10, %s696_s10, %s697_s11  }
  0x2c   : > { %p30_p1 = scmp.ge.s32.totalorder %s29_s28, 2  ;;  %s65_s25 = sadd.s32 1, %s681_s14 }
  0x2d   : > { %p72_p2 = scmp.ne.s32.totalorder %s681_s14, %s677_s13  ;;  %p73_p4 = scmp.eq.s32.totalorder %s693_s17, 0 }
  0x2e   : > { %s975_s28 = smov (%p30_p1, %s29_s28), 0  ;;  %p961_p8 = scmp.ne.s32.totalorder %s956_s21, 0 }
  0x2f   : > { %p74_p6 = por %p73_p4, %p72_p2  ;;  %s62_s27 = ssub.s32 %s689_s16, %s975_s28 }
  0x30   : > { %p819_p10 = por %p961_p8, %p72_p2  ;;  %p487_p12 = scmp.lt.s32.totalorder %s693_s17, 2 }
  0x31   : > { %p63_p13 = scmp.eq.s32.totalorder %s62_s27, 0  ;;  %s170_s30 = sand.u32 1, %s681_s14  }
  0x32   : > { %s463_s4 = smul.u32 24, %s170_s30  ;;  %p831_p11 = pnand %p487_p12, %p74_p6 }
  0x33   : > { %s828_s5 = scalar_select %p63_p13, %s681_s14, %s65_s25  }
  0x34   : > { %s464_s26 = smul.u32 384, %s689_s16  ;;  %s174_s6 = scalar_lea.vmem [#allocation5], %s463_s4 }
  0x35   : > { %s181_s7 = sshll.u32 %s174_s6, 4  ;;  %s842_s19 = scalar_lea.sflag [#allocation6], %s170_s30  ;;  %s840_s7 = int_to_ptr.vmem [resolvable:$true] %s181_s7 }
  0x36   : > { %s838_s18 = scalar_lea.hbm %s948_s1, %s464_s26  ;;  %p579_p3 = pneg %p831_p11 }
  0x37   : > { %s577_s25 = scalar_lea.hbm %s838_s18, 384  ;;  %s582_s26 = scalar_lea.hbm %s948_s1, 768 }
  0x38   : > { %p578_p0 = scmp.ne.s32.totalorder %s838_s18, %s577_s25  ;;  %p583_p9 = scmp.lt.u32.totalorder %s838_s18, %s948_s1 }
  0x39   : > { %p584_p1 = scmp.lt.u32.totalorder %s582_s26, %s577_s25  ;;  %p586_p4 = scmp.lt.u32.totalorder %s577_s25, %s838_s18 }
  0x3a   : > { %p580_p5 = pnand %p579_p3, %p578_p0 }
  0x3b   : > { %p585_p2 = por %p584_p1, %p583_p9 }
  0x3c   : > { %p581_p7 = pneg %p580_p5 }
  0x3d   : > { %p587_p6 = por %p586_p4, %p585_p2 }
  0x3f   : > { %p588_p8 = pnand %p587_p6, %p581_p7 }
  0x41   : > { %591 = shalt.err (!%p588_p8)
}
  0x42   : > { %s592_s30 = scalar_lea.vmem %s840_s7, 384  ;;  %s698_s21 = smov [#allocation5]  }
  0x43   : > { %p593_p12 = scmp.ne.s32.totalorder %s840_s7, %s592_s30  ;;  %s597_s27 = sshll.u32 %s698_s21, 4  ;;  %s598_s27 = int_to_ptr.vmem [resolvable:$false] %s597_s27 }
  0x44   : > { %s599_s4 = scalar_lea.vmem %s598_s27, 768  ;;  %p600_p5 = scmp.lt.s32.totalorder %s840_s7, %s598_s27 }
  0x45   : > { %p595_p13 = pnand %p593_p12, %p579_p3  ;;  %p601_p9 = scmp.lt.s32.totalorder %s599_s4, %s592_s30 }
  0x47   : > { %p596_p0 = pneg %p595_p13  ;;  %p602_p1 = por %p601_p9, %p600_p5 }
  0x49   : > { %p603_p2 = pnand %p602_p1, %p596_p0 }
  0x4b   : > { %606 = shalt.err (!%p603_p2)
}
  0x4c   : > { %481 = dma.hbm_to_vmem [thread:$0]  (!%p831_p11), %s838_s18, 384, %s840_s7, %s842_s19, %s696_s10, %s696_s10, %s697_s11  }
  0x4d   : > { %p964_p3 = scmp.ne.s32.totalorder %s959_s24, 0 }
  0x4e   : > { %p965_p7 = scmp.ne.s32.totalorder (!%p964_p3), %s955_s20, 0 }
  0x4f   : > { %193 = sbr.rel (%p964_p3) target bundleno = 336 (0x150), region = 32 }
  0x56   : > { %660 = dma.done.wait (%p965_p7), [#allocation3], 128  }
  0x57   : > { %662 = vsyncadd (%p965_p7), [#allocation3], 4294967168  ;;  %s880_s25 = sand.u32 1, %s677_s13   ;;  %p966_p4 = scmp.ne.s32.totalorder %s957_s22, 0 }
  0x58   : > { %s465_s8 = smul.u32 24, %s880_s25  ;;  %s200_s26 = scalar_lea.sflag [#allocation6], %s880_s25 }
  0x5a   : > { %s203_s6 = scalar_lea.vmem [#allocation5], %s465_s8 }
  0x5b   : > { %664 = dma.done.wait (%p966_p4), %s200_s26, 384  }
  0x5c   : > { %666 = vsyncadd (%p966_p4), %s200_s26, 4294966912  ;;  %v699_v0 = vmov 0.0   ;;  %vm700_vm0 = vmmov 0   ;;  %v545_v1 = vld [vmem:[%s203_s6] sm:$0xff]   ;;  %v546_v2 = vld [vmem:[%s203_s6 + $0x8] sm:$0xff]   ;;  %vm267_vm1 = vcmask 392192  }
  0x5d   : > { %453 = vmatprep.subr.bf16.mxu0 %v699_v0  ;;  %459 = vmatprep.mubr.msk.bf16.mxu0 %vm700_vm0, %v699_v0  ;;  %v547_v3 = vld [vmem:[%s203_s6 + $0x10] sm:$0xff]   ;;  %v548_v4 = vld [vmem:[#allocation2] sm:$0xff]   ;;  %s436_s20 = sshll.u32 %s880_s25, 4  ;;  %s448_s7 = sshll.u32 %s685_s15, 8 }
  0x5e   : > { %454 = vmatpush3.bf16.msra.mxu0 %v545_v1  ;;  %v437_v5 = vld [vmem:[%s949_s2] ss:$0 sm:$0xff]  ;;  %s225_s10 = scalar_lea.vmem [#allocation7], %s436_s20  ;;  %s898_s9 = scalar_lea.hbm %s950_s3, %s448_s7 }
  0x5f   : > { %455 = vmatprep.subr.bf16.mxu0 %v699_v0  ;;  %s330_s11 = sshll.u32 %s225_s10, 4  ;;  %s315_s30 = scalar_lea.sflag [#allocation4], %s880_s25  ;;  %s893_s11 = int_to_ptr.vmem [resolvable:$true] %s330_s11 }
  0x60   : > { %s607_s15 = scalar_lea.vmem %s893_s11, 256  ;;  %s701_s21 = smov [#allocation7]  }
  0x61   : > { %p608_p11 = scmp.ne.s32.totalorder %s893_s11, %s607_s15  ;;  %s611_s27 = sshll.u32 %s701_s21, 4  ;;  %s612_s27 = int_to_ptr.vmem [resolvable:$false] %s611_s27 }
  0x62   : > { %456 = vmatpush3.bf16.msra.mxu0 %v546_v2  ;;  %s613_s4 = scalar_lea.vmem %s612_s27, 512  ;;  %p614_p12 = scmp.lt.s32.totalorder %s893_s11, %s612_s27 }
  0x63   : > { %457 = vmatprep.subr.bf16.mxu0 %v699_v0  ;;  %p609_p6 = pnand %p608_p11, %p819_p10  ;;  %p615_p13 = scmp.lt.s32.totalorder %s613_s4, %s607_s15 }
  0x65   : > { %p610_p8 = pneg %p609_p6  ;;  %p616_p0 = por %p615_p13, %p614_p12 }
  0x66   : > { %458 = vmatpush3.bf16.msra.mxu0 %v547_v3 }
  0x67   : > { %p617_p5 = pnand %p616_p0, %p610_p8 }
  0x69   : > { %460 = vmatmul.mubr.msk.bf16.vlgmr.msra.gmra.mrb[0].mxu0 %vm267_vm1, %v548_v4 }
 0x13c   : > { %v305_v6 = vpop.f32.mrb[0].mxu0 }
 0x13d   : > { %v306_v7 = vadd.f32 %v437_v5, %v305_v6  ;;  %v461_v8 = vpop.f32.mrb[1].mxu0 }
 0x13e   : > { %v308_v9 = vpop.f32.mrb[2].mxu0 }
 0x13f   : > { %312 = vst [vmem:[%s225_s10] sm:$0xff] %v306_v7  ;;  %v309_v10 = vadd.f32 %v437_v5, %v308_v9  ;;  %v462_v11 = vpop.f32.mrb[3].mxu0 }
 0x141   : > { %313 = vst [vmem:[%s225_s10 + $0x8] sm:$0xff] %v309_v10 }
 0x142   : > { %620 = shalt.err (!%p617_p5)
}
 0x143   : > { %s621_s8 = scalar_lea.hbm %s898_s9, 256  ;;  %s625_s20 = scalar_lea.hbm %s950_s3, 512 }
 0x144   : > { %p622_p9 = scmp.ne.s32.totalorder %s898_s9, %s621_s8  ;;  %p626_p3 = scmp.lt.u32.totalorder %s898_s9, %s950_s3 }
 0x145   : > { %p627_p7 = scmp.lt.u32.totalorder %s625_s20, %s621_s8  ;;  %p629_p11 = scmp.lt.u32.totalorder %s621_s8, %s898_s9 }
 0x146   : > { %p623_p1 = pnand %p622_p9, %p819_p10 }
 0x147   : > { %p628_p4 = por %p627_p7, %p626_p3 }
 0x148   : > { %p624_p2 = pneg %p623_p1 }
 0x149   : > { %p630_p6 = por %p629_p11, %p628_p4 }
 0x14b   : > { %p631_p8 = pnand %p630_p6, %p624_p2 }
 0x14d   : > { %634 = shalt.err (!%p631_p8)
}
 0x14e   : > { %s702_s10 = smov 128   ;;  %s703_s7 = smov 8  }
 0x14f   : > { %472 = dma.vmem_to_hbm [thread:$0]  (%p819_p10), %s893_s11, 256, %s898_s9, %s315_s30, %s702_s10, %s702_s10, %s703_s7  }
 0x150 PF: > { %s345_s18 = sand.u32 1, %s673_s12   ;;  %p967_p12 = scmp.ne.s32.totalorder %s958_s23, 0 }
 0x151   : > { %p968_p13 = scmp.ge.s32.totalorder %s693_s17, 2  ;;  %s346_s19 = scalar_lea.sflag [#allocation4], %s345_s18 }
 0x153   : > { %p483_p0 = pnand %p968_p13, %p967_p12 }
 0x155   : > { %668 = dma.done.wait (!%p483_p0), %s346_s19, 256  }
 0x156   : > { %670 = vsyncadd (!%p483_p0), %s346_s19, 4294967040  ;;  %s20_s17 = sadd.s32 1, %s693_s17   ;;  %s969_s12 = smov %s677_s13 }
 0x157   : > { %p17_p5 = scmp.ge.s32.totalorder %s20_s17, 4   ;;  %s970_s13 = smov %s681_s14 }
 0x158   : > { %s971_s14 = smov %s828_s5  ;;  %s972_s15 = smov %s689_s16 }
 0x159   : > { %s973_s16 = smov %s975_s28  ;;  %19 = sbr.rel (!%p17_p5) target bundleno = 7 (0x7), region = 83 }
 0x160   :  { %351 = vsyncpa [#allocation3], 1 }
 0x161   :  { %353 = vsyncpa [#allocation3 + $0x1], 1 }
 0x162   :  { %354 = vsyncpa [#allocation6], 1 }
 0x163   :  { %356 = vsyncpa [#allocation6 + $0x1], 1 }
 0x164   :  { %357 = vsyncpa [#allocation4], 1 }
 0x165   :  { %359 = vsyncpa [#allocation4 + $0x1], 1 }

</bundles_post_ra>
